<compile_context>
chip_gen: v7x
topology: tpu7x:2x2x1
jax: 0.10.0
libtpu: 0.0.40
codegen_flags: <defaults>
</compile_context>

<pallas_src>
import functools

import jax
import jax.numpy as jnp
from jax.experimental import pallas as pl
from jax.experimental.pallas import tpu as pltpu


# ---------------------------------------------------------------------------
# Kernels: block is (C, TILE_HW); reduce over axis 0 (channels, on sublanes).
# Single-pass stats: mu = s1/C, var = max(s2/C - mu^2, 0).
# ---------------------------------------------------------------------------

def _ln_kernel_withbias(x_ref, wb_ref, o_ref, *, eps: float, inv_c: float):
    x = x_ref[...].astype(jnp.float32)            # (C, T)
    wb = wb_ref[...].astype(jnp.float32)          # (C, 2) -- [weight | bias]
    w = wb[:, 0:1]                                # (C, 1)
    b = wb[:, 1:2]                                # (C, 1)

    s1 = jnp.sum(x, axis=0, keepdims=True)        # (1, T)
    s2 = jnp.sum(x * x, axis=0, keepdims=True)    # (1, T)
    mu = s1 * inv_c
    var = jnp.maximum(s2 * inv_c - mu * mu, 0.0)  # clamp f32 cancellation
    inv = jax.lax.rsqrt(var + eps)

    o_ref[...] = ((x - mu) * (inv * w) + b).astype(o_ref.dtype)


def _ln_kernel_biasfree(x_ref, w_ref, o_ref, *, eps: float, inv_c: float):
    x = x_ref[...].astype(jnp.float32)            # (C, T)
    w = w_ref[...].astype(jnp.float32)            # (C, 1)

    s1 = jnp.sum(x, axis=0, keepdims=True)
    s2 = jnp.sum(x * x, axis=0, keepdims=True)
    mu = s1 * inv_c                               # variance is mean-centered...
    var = jnp.maximum(s2 * inv_c - mu * mu, 0.0)
    inv = jax.lax.rsqrt(var + eps)

    # ...but the mean is NOT subtracted in the normalization.  This matches
    # Restormer's BiasFree_LayerNorm (torch.var centers; forward divides x).
    o_ref[...] = (x * (inv * w)).astype(o_ref.dtype)


# ---------------------------------------------------------------------------
# Wrapper
# ---------------------------------------------------------------------------

def _round_up(v: int, m: int) -> int:
    return ((v + m - 1) // m) * m


def _choose_tile_hw(hw: int, c: int, itemsize: int, max_block_bytes: int,
                    batch: int) -> int:
    """Pick the lane tile (multiple of 128, or the full HW extent).

    Constraints:
      * (C, tile) block in the I/O dtype stays under max_block_bytes.
      * Total grid steps (batch * num_tiles) stays >= ~8 when HW allows it, so
        both TensorCores on v7x get work and the pipeline has steps to overlap.
    """
    if hw <= 128:
        return hw                                    # full-extent block (exempt)

    # VMEM-budget cap (multiple of 128 lanes).
    max_lanes = max(128, (max_block_bytes // max(1, c * itemsize)) // 128 * 128)

    # Enough-steps cap: aim for ~8 total grid steps across batch * tiles.
    min_steps = 8
    want_tiles = max(1, -(-min_steps // max(1, batch)))
    desired = max(128, _round_up(-(-hw // want_tiles), 128))

    return min(max_lanes, desired)


def layer_norm_nchw(x, weight, bias=None, layer_norm_type: str = "WithBias", *,
                    eps: float = 1e-5, max_block_bytes: int = 2 << 20):
    """Matches Restormer LayerNorm(dim, LayerNorm_type).forward on NCHW input."""
    B, C, H, W = x.shape
    HW = H * W
    x3 = x.reshape(B, C, HW)                      # free reshape (contiguous)

    itemsize = jnp.dtype(x.dtype).itemsize
    tile = _choose_tile_hw(HW, C, itemsize, max_block_bytes, B)
    grid = (B, pl.cdiv(HW, tile))

    bias_free = (layer_norm_type == "BiasFree")

    x_spec = pl.BlockSpec((None, C, tile), lambda b, t: (b, 0, t))
    out_spec = pl.BlockSpec((None, C, tile), lambda b, t: (b, 0, t))

    if bias_free:
        kernel = functools.partial(_ln_kernel_biasfree, eps=eps, inv_c=1.0 / C)
        param = weight.reshape(C, 1)
        param_spec = pl.BlockSpec((C, 1), lambda b, t: (0, 0))
    else:
        if bias is None:
            bias = jnp.zeros((C,), dtype=weight.dtype)
        kernel = functools.partial(_ln_kernel_withbias, eps=eps, inv_c=1.0 / C)
        # Pack weight and bias into one small resident (C, 2) block.
        param = jnp.concatenate(
            [weight.reshape(C, 1), bias.astype(weight.dtype).reshape(C, 1)],
            axis=1)
        param_spec = pl.BlockSpec((C, 2), lambda b, t: (0, 0))

    # VMEM budget: 2x in + 2x out double buffers (I/O dtype) + ~4 block-sized
    # f32 temporaries + margin.  Capped with headroom for v7x's 64 MiB VMEM.
    block_io_bytes = C * tile * itemsize
    block_f32_bytes = C * tile * 4
    needed = 4 * block_io_bytes + 4 * block_f32_bytes + (2 << 20)
    vmem_limit = int(min(max(needed, 16 << 20), 48 << 20))

    param_bytes = param.size * jnp.dtype(param.dtype).itemsize
    cost = pl.CostEstimate(
        flops=9 * B * C * HW,
        transcendentals=B * HW,
        bytes_accessed=2 * B * C * HW * itemsize + param_bytes,
    )

    y3 = pl.pallas_call(
        kernel,
        out_shape=jax.ShapeDtypeStruct((B, C, HW), x.dtype),
        grid_spec=pltpu.PrefetchScalarGridSpec(
            num_scalar_prefetch=0,
            grid=grid,
            in_specs=[x_spec, param_spec],
            out_specs=out_spec,
        ),
        compiler_params=pltpu.CompilerParams(
            dimension_semantics=("parallel", "parallel"),
            vmem_limit_bytes=vmem_limit),
        cost_estimate=cost,
    )(x3, param)

    return y3.reshape(B, C, H, W)


# ---------------------------------------------------------------------------
# Pure-JAX reference (mirrors the PyTorch module exactly)
# ---------------------------------------------------------------------------

def _reference(x, weight, bias, layer_norm_type, eps=1e-5):
    B, C, H, W = x.shape
    x3 = jnp.transpose(x, (0, 2, 3, 1)).reshape(B, H * W, C).astype(jnp.float32)
    mu = jnp.mean(x3, axis=-1, keepdims=True)
    var = jnp.mean((x3 - mu) ** 2, axis=-1, keepdims=True)
    w = weight.astype(jnp.float32)
    if layer_norm_type == "BiasFree":
        y = x3 / jnp.sqrt(var + eps) * w
    else:
        y = (x3 - mu) / jnp.sqrt(var + eps) * w + bias.astype(jnp.float32)
    return jnp.transpose(y.reshape(B, H, W, C), (0, 3, 1, 2)).astype(x.dtype)


if __name__ == "__main__":
    key = jax.random.PRNGKey(0)

    # Main test shape (module-implied small config).
    B, C, H, W = 2, 4, 16, 16
    x = jax.random.normal(key, (B, C, H, W), dtype=jnp.float32)

    # Deterministic parameter init as in the module __init__ (ones / zeros).
    weight = jnp.ones((C,), dtype=jnp.float32)
    bias = jnp.zeros((C,), dtype=jnp.float32)

    for ln_type in ("WithBias", "BiasFree"):
        out = jax.block_until_ready(layer_norm_nchw(x, weight, bias, ln_type))
        ref = _reference(x, weight, bias, ln_type)
        assert out.shape == (B, C, H, W)
        assert jnp.allclose(out, ref, atol=1e-5, rtol=1e-5)

    # Ragged spatial extent (HW = 100 < 128): single full-extent lane block.
    x2 = jax.random.normal(jax.random.PRNGKey(1), (1, C, 10, 10), dtype=jnp.float32)
    out2 = jax.block_until_ready(layer_norm_nchw(x2, weight, bias, "WithBias"))
    assert jnp.allclose(out2, _reference(x2, weight, bias, "WithBias"),
                        atol=1e-5, rtol=1e-5)

    # Forced multi-tile grid with a masked partial tail block (HW=400, tile=128).
    x3_in = jax.random.normal(jax.random.PRNGKey(2), (1, C, 20, 20), dtype=jnp.float32)
    out3 = jax.block_until_ready(
        layer_norm_nchw(x3_in, weight, bias, "WithBias", max_block_bytes=2048))
    assert jnp.allclose(out3, _reference(x3_in, weight, bias, "WithBias"),
                        atol=1e-5, rtol=1e-5)

    # BiasFree on the multi-tile / masked-tail path too.
    out3b = jax.block_until_ready(
        layer_norm_nchw(x3_in, weight, None, "BiasFree", max_block_bytes=2048))
    assert jnp.allclose(out3b, _reference(x3_in, weight, bias, "BiasFree"),
                        atol=1e-5, rtol=1e-5)

    # bf16 in / bf16 out (HBM traffic stays narrow; compute is f32 in-kernel).
    xb = x.astype(jnp.bfloat16)
    outb = jax.block_until_ready(layer_norm_nchw(xb, weight, bias, "WithBias"))
    refb = _reference(xb, weight, bias, "WithBias")
    assert outb.dtype == jnp.bfloat16
    assert jnp.allclose(outb.astype(jnp.float32), refb.astype(jnp.float32),
                        atol=2e-2, rtol=2e-2)

    # TODO(synk): optional packed-bf16 epilogue for v7x (VALU relief) not done;
    # stats must stay f32 and the win is v7x-only, so f32 epilogue is kept.

    print("KERNEL_OK")
</pallas_src>

<mosaic_0001>
module attributes {stable_mosaic.version = 11 : i64} {
  func.func @_ln_kernel_withbias(%arg0: i32, %arg1: i32, %arg2: memref<1x4x128xf32, #tpu.memory_space<vmem>>, %arg3: memref<4x2xf32, #tpu.memory_space<vmem>>, %arg4: memref<1x4x128xf32, #tpu.memory_space<vmem>>) attributes {dimension_semantics = [#tpu.dimension_semantics<parallel>, #tpu.dimension_semantics<parallel>], iteration_bounds = array<i64: 2, 2>, scalar_prefetch = 0 : i64, scratch_operands = 0 : i64, tpu.core_type = #tpu.core_type<tc>, window_params = [{transform_indices = @transform_0, window_bounds = array<i64: 1, 4, 128>}, {pipeline_mode = #tpu.pipeline_mode<synchronous>, transform_indices = @transform_1, window_bounds = array<i64: 4, 2>}, {transform_indices = @transform_2, window_bounds = array<i64: 1, 4, 128>}]} {
    %c0 = arith.constant 0 : index
    %c0_0 = arith.constant 0 : index
    %c0_1 = arith.constant 0 : index
    %0 = vector.load %arg2[%c0, %c0_0, %c0_1] : memref<1x4x128xf32, #tpu.memory_space<vmem>>, vector<1x4x128xf32>
    %1 = vector.shape_cast %0 : vector<1x4x128xf32> to vector<4x128xf32>
    %c0_2 = arith.constant 0 : index
    %c0_3 = arith.constant 0 : index
    %2 = vector.load %arg3[%c0_2, %c0_3] : memref<4x2xf32, #tpu.memory_space<vmem>>, vector<4x2xf32>
    %3 = vector.extract_strided_slice %2 {offsets = [0, 0], sizes = [4, 1], strides = [1, 1]} : vector<4x2xf32> to vector<4x1xf32>
    %4 = vector.extract_strided_slice %2 {offsets = [0, 1], sizes = [4, 1], strides = [1, 1]} : vector<4x2xf32> to vector<4x1xf32>
    %cst = arith.constant dense<0.000000e+00> : vector<128xf32>
    %5 = vector.multi_reduction <add>, %1, %cst [0] : vector<4x128xf32> to vector<128xf32>
    %6 = vector.shape_cast %5 : vector<128xf32> to vector<1x128xf32>
    %7 = arith.mulf %1, %1 : vector<4x128xf32>
    %cst_4 = arith.constant dense<0.000000e+00> : vector<128xf32>
    %8 = vector.multi_reduction <add>, %7, %cst_4 [0] : vector<4x128xf32> to vector<128xf32>
    %9 = vector.shape_cast %8 : vector<128xf32> to vector<1x128xf32>
    %cst_5 = arith.constant 2.500000e-01 : f32
    %10 = vector.broadcast %cst_5 : f32 to vector<1x128xf32>
    %11 = arith.mulf %6, %10 : vector<1x128xf32>
    %cst_6 = arith.constant 2.500000e-01 : f32
    %12 = vector.broadcast %cst_6 : f32 to vector<1x128xf32>
    %13 = arith.mulf %9, %12 : vector<1x128xf32>
    %14 = arith.mulf %11, %11 : vector<1x128xf32>
    %15 = arith.subf %13, %14 : vector<1x128xf32>
    %cst_7 = arith.constant 0.000000e+00 : f32
    %16 = vector.broadcast %cst_7 : f32 to vector<1x128xf32>
    %17 = arith.maximumf %15, %16 : vector<1x128xf32>
    %cst_8 = arith.constant 9.99999974E-6 : f32
    %18 = vector.broadcast %cst_8 : f32 to vector<1x128xf32>
    %19 = arith.addf %17, %18 : vector<1x128xf32>
    %20 = math.rsqrt %19 : vector<1x128xf32>
    %21 = vector.broadcast %11 : vector<1x128xf32> to vector<4x128xf32>
    %22 = arith.subf %1, %21 : vector<4x128xf32>
    %23 = vector.broadcast %20 : vector<1x128xf32> to vector<4x128xf32>
    %24 = vector.broadcast %3 : vector<4x1xf32> to vector<4x128xf32>
    %25 = arith.mulf %23, %24 : vector<4x128xf32>
    %26 = arith.mulf %22, %25 : vector<4x128xf32>
    %27 = vector.broadcast %4 : vector<4x1xf32> to vector<4x128xf32>
    %28 = arith.addf %26, %27 : vector<4x128xf32>
    %c0_9 = arith.constant 0 : index
    %c0_10 = arith.constant 0 : index
    %c0_11 = arith.constant 0 : index
    %29 = vector.load %arg4[%c0_9, %c0_10, %c0_11] : memref<1x4x128xf32, #tpu.memory_space<vmem>>, vector<1x4x128xf32>
    %30 = vector.shape_cast %29 : vector<1x4x128xf32> to vector<4x128xf32>
    %31 = vector.shape_cast %28 : vector<4x128xf32> to vector<1x4x128xf32>
    tpu.vector_store %arg4[%c0_9, %c0_10, %c0_11], %31 {strides = array<i32>} : memref<1x4x128xf32, #tpu.memory_space<vmem>>, vector<1x4x128xf32>,
    return
  }
  func.func @transform_0(%arg0: i32, %arg1: i32) -> (i32, i32, i32) {
    %c0_i32 = arith.constant 0 : i32
    %c0_i32_0 = arith.constant 0 : i32
    return %arg0, %c0_i32, %arg1 : i32, i32, i32
  }
  func.func @transform_1(%arg0: i32, %arg1: i32) -> (i32, i32) {
    %c0_i32 = arith.constant 0 : i32
    %c0_i32_0 = arith.constant 0 : i32
    %c0_i32_1 = arith.constant 0 : i32
    return %c0_i32, %c0_i32_0 : i32, i32
  }
  func.func @transform_2(%arg0: i32, %arg1: i32) -> (i32, i32, i32) {
    %c0_i32 = arith.constant 0 : i32
    %c0_i32_0 = arith.constant 0 : i32
    return %arg0, %c0_i32, %arg1 : i32, i32, i32
  }
}

</mosaic_0001>

<bundles_post_ra>
// kernel: tpu_custom_call.1
= control target key start
LH: loop header
LB: loop body
LE: loop exit
PB: predicated region body
PF: predicated region fallthrough
CT: control target
= control target key end

     0   :  { %7 = vsyncpa [#allocation3], 0  ;;  %s766_s0 = inlined_call_operand.hbm [shape: f32[2,4,256], index: 0, kind: input, shape index: {}]   ;;  %s767_s1 = inlined_call_operand.vmem [shape: f32[4,2], index: 1, kind: input, shape index: {}]   ;;  %s768_s2 = inlined_call_operand.hbm [shape: f32[2,4,256], index: 2, kind: output, shape index: {}]  }
   0x1   :  { %9 = vsyncpa [#allocation3 + $0x1], 0 }
   0x2   :  { %10 = vsyncpa [#allocation4], 0 }
   0x3   :  { %12 = vsyncpa [#allocation4 + $0x1], 0  ;;  %s565_s9 = smov 0   ;;  %s567_s10 = smov 0  }
   0x4   :  { %s569_s11 = smov 0   ;;  %s571_s12 = smov 0  }
   0x5   :  { %s573_s13 = smov 0   ;;  %s575_s14 = smov 0  }
   0x6   :  { %s577_s15 = smov 0   ;;  %s579_s16 = smov 0  }
   0x7 LB: > { %s317_s17 = sadd.s32 4294967295, %s544_s16   ;;  %s318_s18 = sadd.s32 4294967294, %s544_s16   ;;  %s544_s16 = sphi %s579_s16, %s18_s16   ;;  %s540_s15 = sphi %s577_s15, %s785_s15   ;;  %s536_s14 = sphi %s575_s14, %s784_s14   ;;  %s532_s13 = sphi %s573_s13, %s783_s13   ;;  %s528_s12 = sphi %s571_s12, %s782_s12   ;;  %s524_s11 = sphi %s569_s11, %s781_s11   ;;  %s520_s10 = sphi %s567_s10, %s780_s10   ;;  %s516_s9 = sphi %s565_s9, %s779_s9  }
   0x8   : > { %s27_s19 = sadd.s32 1, %s536_s14  ;;  %s30_s20 = sadd.s32 1, %s540_s15 }
   0x9   : > { %p28_p0 = scmp.ge.s32.totalorder %s27_s19, 2  ;;  %s39_s21 = sadd.s32 1, %s524_s11 }
   0xa   : > { %p46_p1 = scmp.ne.s32.totalorder %s524_s11, %s520_s10  ;;  %p47_p2 = scmp.eq.s32.totalorder %s544_s16, 0 }
   0xb   : > { %s787_s19 = smov (%p28_p0, %s27_s19), 0  ;;  %s789_s20 = smov (!%p28_p0, %s30_s20), %s540_s15 }
   0xc   : > { %s35_s22 = ssub.s32 %s536_s14, %s787_s19  ;;  %p618_p3 = por %p47_p2, %p46_p1 }
   0xd   : > { %p32_p4 = scmp.ge.s32.totalorder %s789_s20, 2  ;;  %p52_p5 = scmp.ne.s32.totalorder %s520_s10, %s516_s9 }
   0xe   : > { %p53_p6 = scmp.eq.s32.totalorder %s317_s17, 0  ;;  %p99_p7 = scmp.eq.s32.totalorder %s317_s17, 3 }
   0xf   : > { %s791_s20 = smov (%p32_p4, %s789_s20), 0  ;;  %p105_p10 = scmp.eq.s32.totalorder %s318_s18, 3 }
  0x10   : > { %p626_p8 = por %p53_p6, %p52_p5  ;;  %p630_p9 = por %p99_p7, %p46_p1 }
  0x11   : > { %s34_s26 = ssub.s32 %s540_s15, %s791_s20  ;;  %p636_p12 = por %p105_p10, %p52_p5 }
  0x12   : > { %s772_s25 = scalar_select %p630_p9, 1, 0 }
  0x13   : > { %s36_s27 = sor.u32 %s35_s22, %s34_s26  ;;  %p344_p13 = scmp.lt.s32.totalorder %s544_s16, 4 }
  0x14   : > { %p37_p11 = scmp.eq.s32.totalorder %s36_s27, 0  ;;  %s128_s29 = sand.u32 1, %s524_s11  }
  0x15   : > { %s773_s28 = scalar_select %p636_p12, 1, 0 }
  0x16   : > { %s643_s30 = scalar_select %p37_p11, %s524_s11, %s39_s21  }
  0x17   : > { %s321_s3 = sshll.u32 %s128_s29, 2  ;;  %s322_s4 = sshll.u32 %s540_s15, 1 }
  0x18   : > { %s137_s5 = sadd.s32 %s536_s14, %s322_s4  ;;  %s132_s6 = scalar_lea.vmem [#allocation2], %s321_s3 }
  0x19   : > { %s141_s7 = sshll.u32 %s132_s6, 4  ;;  %s323_s8 = sshll.u32 %s137_s5, 6  ;;  %s647_s7 = int_to_ptr.vmem [resolvable:$true] %s141_s7 }
  0x1a   : > { %s652_s22 = scalar_lea.hbm %s766_s0, %s323_s8  ;;  %p656_p0 = pnand %p344_p13, %p618_p3 }
  0x1b   : > { %s129_s26 = scalar_lea.sflag [#allocation3], %s128_s29  ;;  %s416_s27 = scalar_lea.hbm %s652_s22, 64 }
  0x1c   : > { %p417_p4 = scmp.ne.s32.totalorder %s652_s22, %s416_s27  ;;  %p418_p5 = pneg %p656_p0 }
  0x1d   : > { %s421_s4 = scalar_lea.hbm %s766_s0, 256  ;;  %p422_p3 = scmp.lt.u32.totalorder %s652_s22, %s766_s0 }
  0x1e   : > { %p419_p6 = pnand %p418_p5, %p417_p4  ;;  %p423_p10 = scmp.lt.u32.totalorder %s421_s4, %s416_s27 }
  0x1f   : > { %p425_p13 = scmp.lt.u32.totalorder %s416_s27, %s652_s22 }
  0x20   : > { %p420_p7 = pneg %p419_p6  ;;  %p424_p11 = por %p423_p10, %p422_p3 }
  0x22   : > { %p426_p1 = por %p425_p13, %p424_p11 }
  0x24   : > { %p427_p2 = pnand %p426_p1, %p420_p7 }
  0x26   : > { %430 = shalt.err (!%p427_p2)
}
  0x27   : > { %s431_s29 = scalar_lea.vmem %s647_s7, 64  ;;  %s546_s8 = smov [#allocation2]  }
  0x28   : > { %p432_p4 = scmp.ne.s32.totalorder %s647_s7, %s431_s29  ;;  %s436_s17 = sshll.u32 %s546_s8, 4  ;;  %s437_s17 = int_to_ptr.vmem [resolvable:$false] %s436_s17 }
  0x29   : > { %s438_s18 = scalar_lea.vmem %s437_s17, 128  ;;  %p439_p9 = scmp.lt.s32.totalorder %s647_s7, %s437_s17 }
  0x2a   : > { %p434_p6 = pnand %p432_p4, %p418_p5  ;;  %p440_p3 = scmp.lt.s32.totalorder %s438_s18, %s431_s29 }
  0x2c   : > { %p435_p12 = pneg %p434_p6  ;;  %p441_p10 = por %p440_p3, %p439_p9 }
  0x2e   : > { %p442_p11 = pnand %p441_p10, %p435_p12 }
  0x30   : > { %445 = shalt.err (!%p442_p11)
}
  0x31   : > { %339 = dma.hbm_to_vmem [thread:$0]  (!%p656_p0), %s652_s22, 64, %s647_s7, %s129_s26  }
  0x32   : > { %p775_p1 = scmp.lt.s32.totalorder %s544_s16, 5  ;;  %p776_p2 = scmp.ge.s32.totalorder %s544_s16, 1 }
  0x34   : > { %p147_p5 = pnand %p776_p2, %p775_p1 }
  0x35   : > { %s692_s27 = sand.u32 (!%p147_p5), 1, %s520_s10  }
  0x36   : > { %150 = sbr.rel (%p147_p5) target bundleno = 213 (0xd5), region = 28  ;;  %s325_s23 = sshll.u32 (!%p147_p5), %s692_s27, 2 }
  0x37   : > { %s153_s3 = scalar_lea.sflag (!%p147_p5), [#allocation3], %s692_s27  ;;  %s156_s21 = scalar_lea.vmem (!%p147_p5), [#allocation2], %s325_s23 }
  0x3d   : > { %507 = dma.done.wait (%p626_p8), %s153_s3, 64  }
  0x3e   : > { %509 = vsyncadd (%p626_p8), %s153_s3, 4294967232  ;;  %v547_v0 = vmov 0   ;;  %v178_v1 = vld [vmem:[%s767_s1] sm:$0xf]  ;;  %v548_v2 = vmov 1   ;;  %vm179_vm0 = vcmask 1043456  }
  0x3f   : > { %412 = vset.pattern.permute.xlu0 %v547_v0  ;;  %v177_v3 = vld [vmem:[%s156_s21] sm:$0xf]  ;;  %s328_s24 = sshll.u32 %s532_s13, 1  ;;  %s176_s5 = scalar_lea.vmem [#allocation5], %s325_s23 }
  0x40   : > { %205 = vperm.xlu0 %412, %v178_v1   ;;  %v180_v4 = vsel %vm179_vm0, %v177_v3, 0.0  ;;  %v187_v5 = vmul.f32 %v177_v3, %v177_v3  ;;  %s228_s26 = sadd.s32 %s528_s12, %s328_s24  ;;  %s232_s6 = sshll.u32 %s176_s5, 4  ;;  %s714_s6 = int_to_ptr.vmem [resolvable:$true] %s232_s6 }
  0x41   : > { %v181_v6 = vrot.slane %v180_v4, 4  ;;  %s329_s4 = sshll.u32 %s228_s26, 6  ;;  %s217_s12 = scalar_lea.sflag [#allocation4], %s692_s27 }
  0x42   : > { %v188_v7 = vsel %vm179_vm0, %v187_v5, 0.0  ;;  %s712_s17 = scalar_lea.hbm %s768_s2, %s329_s4  ;;  %s446_s13 = scalar_lea.vmem %s714_s6, 64 }
  0x43   : > { %v182_v8 = vadd.f32 %v181_v6, %v180_v4  ;;  %v189_v9 = vrot.slane %v188_v7, 4  ;;  %p447_p8 = scmp.ne.s32.totalorder %s714_s6, %s446_s13  ;;  %p777_p9 = scmp.ne.s32.totalorder %s772_s25, 0 }
  0x44   : > { %413 = vset.pattern.permute.xlu0 %v548_v2  ;;  %s549_s18 = smov [#allocation5]  }
  0x45   : > { %211 = vperm.xlu0 %413, %v178_v1   ;;  %v183_v10 = vrot.slane %v182_v8, 2  ;;  %v190_v11 = vadd.f32 %v189_v9, %v188_v7  ;;  %p448_p12 = pnand %p447_p8, %p777_p9  ;;  %s450_s23 = sshll.u32 %s549_s18, 4  ;;  %s451_s23 = int_to_ptr.vmem [resolvable:$false] %s450_s23 }
  0x46   : > { %s452_s3 = scalar_lea.vmem %s451_s23, 128  ;;  %p453_p7 = scmp.lt.s32.totalorder %s714_s6, %s451_s23 }
  0x47   : > { %v184_v12 = vadd.f32 %v183_v10, %v182_v8  ;;  %v191_v13 = vrot.slane %v190_v11, 2  ;;  %p449_p0 = pneg %p448_p12  ;;  %p454_p13 = scmp.lt.s32.totalorder %s452_s3, %s446_s13 }
  0x49   : > { %v185_v14 = vrot.slane %v184_v12, 1  ;;  %v192_v15 = vadd.f32 %v191_v13, %v190_v11  ;;  %p455_p4 = por %p454_p13, %p453_p7 }
  0x4b   : > { %v186_v16 = vadd.f32 %v185_v14, %v184_v12  ;;  %v193_v17 = vrot.slane %v192_v15, 1  ;;  %p456_p6 = pnand %p455_p4, %p449_p0 }
  0x4d   : > { %v194_v18 = vadd.f32 %v193_v17, %v192_v15  ;;  %v195_v19 = vmul.f32 0.25, %v186_v16 }
  0x4f   : > { %v196_v20 = vmul.f32 0.25, %v194_v18  ;;  %v197_v21 = vmul.f32 %v195_v19, %v195_v19  ;;  %v202_v26 = vsub.f32 %v177_v3, %v195_v19 }
  0x51   : > { %v198_v22 = vsub.f32 %v196_v20, %v197_v21 }
  0x53   : > { %v199_v23 = vmax.f32 %v198_v22, 0.0 }
  0x55   : > { %v200_v24 = vadd.f32 1e-05, %v199_v23 }
  0x57   : > { %414 = vrsqrt.f32 %v200_v24 }
  0x61   : > { %v415_v25 = vpop.eup %414 }
  0xbf   : > { %v206_v27 = vpop.permute.xlu0 %205 }
  0xc0   : > { %v208_v28 = vmul.f32 %v415_v25, %v206_v27 }
  0xc2   : > { %v209_v29 = vmul.f32 %v208_v28, %v202_v26 }
  0xc4   : > { %v212_v30 = vpop.permute.xlu0 %211 }
  0xc5   : > { %v214_v31 = vadd.f32 %v212_v30, %v209_v29 }
  0xc7   : > { %215 = vst [vmem:[%s176_s5] sm:$0xf] %v214_v31 }
  0xc8   : > { %459 = shalt.err (!%p456_p6)
}
  0xc9   : > { %s460_s27 = scalar_lea.hbm %s712_s17, 64  ;;  %s464_s22 = scalar_lea.hbm %s768_s2, 256 }
  0xca   : > { %p461_p3 = scmp.ne.s32.totalorder %s712_s17, %s460_s27  ;;  %p465_p1 = scmp.lt.u32.totalorder %s712_s17, %s768_s2 }
  0xcb   : > { %p466_p2 = scmp.lt.u32.totalorder %s464_s22, %s460_s27  ;;  %p468_p8 = scmp.lt.u32.totalorder %s460_s27, %s712_s17 }
  0xcc   : > { %p462_p10 = pnand %p461_p3, %p777_p9 }
  0xcd   : > { %p467_p5 = por %p466_p2, %p465_p1 }
  0xce   : > { %p463_p11 = pneg %p462_p10 }
  0xcf   : > { %p469_p12 = por %p468_p8, %p467_p5 }
  0xd1   : > { %p470_p0 = pnand %p469_p12, %p463_p11 }
  0xd3   : > { %473 = shalt.err (!%p470_p0)
}
  0xd4   : > { %334 = dma.vmem_to_hbm [thread:$0]  (%p777_p9), %s714_s6, 64, %s712_s17, %s217_s12  }
  0xd5 PF: > { %p345_p7 = scmp.ge.s32.totalorder %s544_s16, 2  ;;  %s244_s4 = sand.u32 1, %s516_s9  }
  0xd6   : > { %p778_p13 = scmp.ne.s32.totalorder %s773_s28, 0  ;;  %s245_s5 = scalar_lea.sflag [#allocation4], %s244_s4 }
  0xd8   : > { %p341_p4 = pnand %p345_p7, %p778_p13 }
  0xda   : > { %511 = dma.done.wait (!%p341_p4), %s245_s5, 64  }
  0xdb   : > { %513 = vsyncadd (!%p341_p4), %s245_s5, 4294967232  ;;  %s18_s16 = sadd.s32 1, %s544_s16   ;;  %s779_s9 = smov %s520_s10 }
  0xdc   : > { %p15_p6 = scmp.ge.s32.totalorder %s18_s16, 6   ;;  %s780_s10 = smov %s524_s11 }
  0xdd   : > { %s781_s11 = smov %s643_s30  ;;  %s782_s12 = smov %s536_s14 }
  0xde   : > { %s783_s13 = smov %s540_s15  ;;  %s784_s14 = smov %s787_s19 }
  0xdf   : > { %s785_s15 = smov %s791_s20  ;;  %17 = sbr.rel (!%p15_p6) target bundleno = 7 (0x7), region = 73 }
  0xe6   :  { %250 = vsyncpa [#allocation3], 1 }
  0xe7   :  { %252 = vsyncpa [#allocation3 + $0x1], 1 }
  0xe8   :  { %253 = vsyncpa [#allocation4], 1 }
  0xe9   :  { %255 = vsyncpa [#allocation4 + $0x1], 1 }

</bundles_post_ra>
